<compile_context>
chip_gen: v6e
topology: v6e:2x2x1
jax: 0.10.0
libtpu: 0.0.40
codegen_flags: <defaults>
</compile_context>

<pallas_src>
import jax
import jax.numpy as jnp
from jax.experimental import pallas as pl
from jax.experimental.pallas import tpu as pltpu

K = 7            # conv kernel size
PAD = K // 2     # 'same' padding


def _round_up(n, m):
    return ((n + m - 1) // m) * m


_ROLL_SIGN = None


def _roll_sign():
    """+1 if pltpu.roll follows jnp.roll's shift convention on this backend, else -1."""
    global _ROLL_SIGN
    if _ROLL_SIGN is None:
        def probe(x_ref, o_ref):
            o_ref[...] = pltpu.roll(x_ref[...], 1, axis=1)

        x = jnp.broadcast_to(jnp.arange(128, dtype=jnp.float32)[None, :], (8, 128))
        out = pl.pallas_call(
            probe, out_shape=jax.ShapeDtypeStruct((8, 128), jnp.float32))(x)
        _ROLL_SIGN = 1 if bool(jnp.allclose(out, jnp.roll(x, 1, axis=1))) else -1
    return _ROLL_SIGN


def _make_kernel(C, H, W, roll_sign):
    HW = H * W

    def kernel(x_ref, w_ref, o_ref):
        # x_ref : (1, C, HW) VMEM input block (one batch element per grid step)
        # w_ref : (2*K*K,)   SMEM conv weights, index = i*K*K + dy*K + dx
        # o_ref : (1, C, HW) VMEM output block

        # ---- 1. channel mean + max: lane-dense tree reductions, f32 accum ----
        xf = x_ref[0].astype(jnp.float32)                       # (C, HW)
        avg = jnp.sum(xf, axis=0, keepdims=True) * (1.0 / C)    # (1, HW)
        mx = jnp.max(xf, axis=0, keepdims=True)                 # (1, HW)
        stacked = jnp.concatenate([avg, mx], axis=0)            # (2, HW)

        # ---- 2. hoist all 98 scalar weights out of the tap loops -------------
        w_avg = [[w_ref[0 * K * K + dy * K + dx] for dx in range(K)]
                 for dy in range(K)]
        w_max = [[w_ref[1 * K * K + dy * K + dx] for dx in range(K)]
                 for dy in range(K)]

        # ---- 3. 7x7 'same' conv on the flat (1, HW) layout --------------------
        # Tap (dy, dx) reads flat index q + (dy-PAD)*W + (dx-PAD); positions
        # whose source pixel lies outside the image (incl. every cyclic wrap)
        # are zeroed by the column / row masks, i.e. exact zero padding.
        lane = jax.lax.broadcasted_iota(jnp.int32, (1, HW), 1)
        col = lane % W
        row = lane // W

        def roll_flat(v, shift):
            amt = (roll_sign * shift) % HW
            return v if amt == 0 else pltpu.roll(v, amt, axis=1)

        parts = [None] * K                      # per-dy partial sums, (1, HW)
        for dx in range(K):
            t = roll_flat(stacked, PAD - dx)    # (2, HW): both planes at once
            if dx != PAD:
                src_col = col + (dx - PAD)
                valid = jnp.logical_and(src_col >= 0, src_col < W)
                t = jnp.where(valid, t, 0.0)
            ta = t[0:1]                         # avg plane, (1, HW)
            tm = t[1:2]                         # max plane, (1, HW)
            for dy in range(K):
                c = w_avg[dy][dx] * ta + w_max[dy][dx] * tm
                parts[dy] = c if parts[dy] is None else parts[dy] + c

        conv = None
        for dy in range(K):
            u = roll_flat(parts[dy], (PAD - dy) * W)
            if dy != PAD:
                src_row = row + (dy - PAD)
                validy = jnp.logical_and(src_row >= 0, src_row < H)
                u = jnp.where(validy, u, 0.0)
            conv = u if conv is None else conv + u

        att = jax.nn.sigmoid(conv)              # (1, HW) attention map, f32

        # ---- 4. gate: lane-dense multiply + unmasked lane-dense store ---------
        o_ref[0] = (x_ref[0].astype(jnp.float32) * att).astype(o_ref.dtype)

    return kernel


def spatial_attention(x, w):
    """x: (B, C, H, W); w: (1, 2, K, K) OIHW conv weight (no bias)."""
    B, C, H, W = x.shape
    HW = H * W
    x_flat = x.reshape(B, C, HW)                       # free for contiguous NCHW
    w_flat = w.reshape(-1).astype(jnp.float32)         # index = i*K*K + dy*K + dx

    # VMEM accounting on the padded (8, 128) layout of the real blocks:
    # in + out blocks, each double-buffered by the pipeline, plus headroom.
    padded_block = _round_up(C, 8) * _round_up(HW, 128) * x.dtype.itemsize
    need = 4 * padded_block + (2 << 20)
    try:
        vmem_cap = int(pltpu.get_tpu_info().vmem_capacity_bytes)
    except Exception:
        vmem_cap = 64 << 20                            # v7x lower bound (64 MiB / TC)
    vmem_limit = int(min(max(need, 32 << 20), vmem_cap - (8 << 20)))

    flops = B * (3 * C * HW + 4 * K * K * HW)
    cost = pl.CostEstimate(
        flops=int(flops),
        transcendentals=int(B * HW),
        bytes_accessed=int(2 * B * C * HW * x.dtype.itemsize + w_flat.size * 4))

    kernel = _make_kernel(C, H, W, _roll_sign())
    out_flat = pl.pallas_call(
        kernel,
        out_shape=jax.ShapeDtypeStruct((B, C, HW), x.dtype),
        grid=(B,),
        in_specs=[
            pl.BlockSpec((1, C, HW), lambda b: (b, 0, 0)),
            pl.BlockSpec(memory_space=pltpu.SMEM),     # scalar conv weights
        ],
        out_specs=pl.BlockSpec((1, C, HW), lambda b: (b, 0, 0)),
        compiler_params=pltpu.CompilerParams(
            dimension_semantics=("parallel",),
            vmem_limit_bytes=vmem_limit,
        ),
        cost_estimate=cost,
    )(x_flat, w_flat)
    return out_flat.reshape(B, C, H, W)


def reference_forward(x, w):
    """Pure-JAX reference identical to the PyTorch forward."""
    avg = jnp.mean(x, axis=1, keepdims=True)
    mx = jnp.max(x, axis=1, keepdims=True)
    att_in = jnp.concatenate([avg, mx], axis=1)                # (B, 2, H, W)
    conv = jax.lax.conv_general_dilated(
        att_in, w, window_strides=(1, 1), padding=[(PAD, PAD), (PAD, PAD)],
        dimension_numbers=("NCHW", "OIHW", "NCHW"))
    return x * jax.nn.sigmoid(conv)


if __name__ == "__main__":
    B, C, H, W = 2, 4, 16, 16

    key = jax.random.PRNGKey(0)
    kx, kw = jax.random.split(key)
    x = jax.random.normal(kx, (B, C, H, W), dtype=jnp.float32)

    # Deterministic conv weight init (mimics PyTorch kaiming-uniform bound 1/sqrt(fan_in))
    fan_in = 2 * K * K
    bound = 1.0 / jnp.sqrt(jnp.float32(fan_in))
    w = jax.random.uniform(kw, (1, 2, K, K), dtype=jnp.float32,
                           minval=-bound, maxval=bound)

    out = spatial_attention(x, w)
    out = jax.block_until_ready(out)

    ref = reference_forward(x, w)
    assert out.shape == (B, C, H, W)
    assert jnp.allclose(out, ref, atol=1e-5, rtol=1e-5), "mismatch vs reference"

    print("KERNEL_OK")
</pallas_src>

<mosaic_0001>
module attributes {stable_mosaic.version = 11 : i64} {
  func.func @probe(%arg0: memref<8x128xf32, #tpu.memory_space<vmem>>, %arg1: memref<8x128xf32, #tpu.memory_space<vmem>>) attributes {dimension_semantics = [], scalar_prefetch = 0 : i64, scratch_operands = 0 : i64, tpu.core_type = #tpu.core_type<tc>} {
    %c0 = arith.constant 0 : index
    %c0_0 = arith.constant 0 : index
    %0 = vector.load %arg0[%c0, %c0_0] : memref<8x128xf32, #tpu.memory_space<vmem>>, vector<8x128xf32>
    %c1_i32 = arith.constant 1 : i32
    %1 = tpu.dynamic_rotate %0 by %c1_i32 dim 1 : vector<8x128xf32>, i32 -> vector<8x128xf32>
    %c0_1 = arith.constant 0 : index
    %c0_2 = arith.constant 0 : index
    %2 = vector.load %arg1[%c0_1, %c0_2] : memref<8x128xf32, #tpu.memory_space<vmem>>, vector<8x128xf32>
    tpu.vector_store %arg1[%c0_1, %c0_2], %1 {strides = array<i32>} : memref<8x128xf32, #tpu.memory_space<vmem>>, vector<8x128xf32>,
    return
  }
}

</mosaic_0001>

<bundles_post_ra>
// kernel: tpu_custom_call.1
= control target key start
LH: loop header
LB: loop body
LE: loop exit
PB: predicated region body
PF: predicated region fallthrough
CT: control target
= control target key end

     0   :  { %6 = vsyncpa [#allocation3], 0  ;;  %s106_s0 = inlined_call_operand.hbm [shape: f32[8,128], index: 0, kind: input, shape index: {}]   ;;  %s107_s1 = inlined_call_operand.hbm [shape: f32[8,128], index: 1, kind: output, shape index: {}]  }
   0x1   :  { %7 = vsyncpa [#allocation4], 0  ;;  %s87_s6 = smov [#allocation2]  }
   0x2   :  { %s14_s7 = sshll.u32 %s87_s6, 4  ;;  %s15_s7 = int_to_ptr.vmem [resolvable:$true] %s14_s7 }
   0x3   :  { %s51_s8 = scalar_lea.vmem %s15_s7, 128  ;;  %p56_p1 = scmp.lt.s32.totalorder %s15_s7, %s15_s7 }
   0x4   :  { %p52_p0 = scmp.ne.s32.totalorder %s15_s7, %s51_s8  ;;  %p57_p2 = scmp.lt.s32.totalorder %s51_s8, %s51_s8 }
   0x6   :  { %p58_p3 = por %p57_p2, %p56_p1 }
   0x8   :  { %p59_p4 = pnand %p58_p3, %p52_p0 }
   0xa   :  { %62 = shalt.err (!%p59_p4)
}
   0xb   :  { %17 = dma.hbm_to_vmem [thread:$0]  %s106_s0, 128, %s15_s7, [#allocation3]  }
   0xc   :  { %83 = dma.done.wait [#allocation3], 128  }
   0xd   :  { %84 = vsyncadd [#allocation3], 4294967168  ;;  %v21_v0 = vld [vmem:[#allocation2] sm:$0xff]  ;;  %s88_s11 = smov 1   ;;  %s89_s12 = smov [#allocation5]  }
   0xe   :  { %22 = vrot.lane.b32.xlu0 %v21_v0, %s88_s11  ;;  %s31_s13 = sshll.u32 %s89_s12, 4  ;;  %s32_s13 = int_to_ptr.vmem [resolvable:$true] %s31_s13 }
   0xf   :  { %s63_s14 = scalar_lea.vmem %s32_s13, 128  ;;  %p68_p6 = scmp.lt.s32.totalorder %s32_s13, %s32_s13 }
  0x10   :  { %p64_p5 = scmp.ne.s32.totalorder %s32_s13, %s63_s14  ;;  %p69_p7 = scmp.lt.s32.totalorder %s63_s14, %s63_s14 }
  0x12   :  { %p70_p8 = por %p69_p7, %p68_p6 }
  0x14   :  { %p71_p9 = pnand %p70_p8, %p64_p5 }
  0x80   :  { %v23_v1 = vpop.permute.xlu0 %22 }
  0x81   :  { %24 = vst [vmem:[#allocation5] sm:$0xff] %v23_v1 }
  0x82   :  { %74 = shalt.err (!%p71_p9)
}
  0x83   :  { %34 = dma.vmem_to_hbm [thread:$0]  %s32_s13, 128, %s107_s1, [#allocation4]  }
  0x84   :  { %85 = dma.done.wait [#allocation4], 128  }
  0x85   :  { %86 = vsyncadd [#allocation4], 4294967168 }
  0x86   :  { %38 = vsyncpa [#allocation3], 1 }
  0x87   :  { %39 = vsyncpa [#allocation4], 1 }

</bundles_post_ra>
